<compile_context>
chip_gen: v7x
topology: tpu7x:2x2x1
jax: 0.10.0
libtpu: 0.0.40
codegen_flags: <defaults>
</compile_context>

<pallas_src>
import jax
import jax.numpy as jnp
from jax.experimental import pallas as pl
from jax.experimental.pallas import tpu as pltpu

NZ = 10
HIDDEN = 128
OUT = 28 * 28          # 784 (full-extent last dim -> no feature padding needed)
TB_MAX = 1024          # 2 bufs x (tb*784*4B out) + intermediates ~= 10 MiB @ tb=1024
                       # -> safe under a 32 MiB VMEM limit even on v7x (64 MiB/TC)


def _round_up(n, m):
    return ((n + m - 1) // m) * m


def _generator_kernel(x_ref, w1_ref, b1_ref, w2_ref, b2_ref, o_ref):
    # linear1: (tb, nz)bf16 @ (nz, 128)bf16 -> f32 accumulate; bias + ReLU in f32
    h = jnp.dot(x_ref[...], w1_ref[...], preferred_element_type=jnp.float32)
    h = jnp.maximum(h + b1_ref[...], 0.0)
    # linear2: (tb, 128)bf16 @ (128, 784)bf16 -> f32 accumulate
    y = jnp.dot(h.astype(jnp.bfloat16), w2_ref[...],
                preferred_element_type=jnp.float32)
    z = y + b2_ref[...]
    # Sigmoid ("relu2" attribute in the module is nn.Sigmoid): exp on EUP,
    # approx reciprocal (vrcp) also on EUP -> keeps the VPU free.
    t = jnp.exp(-z)
    o_ref[...] = pl.reciprocal(1.0 + t, approx=True).astype(o_ref.dtype)


def prepare_params(w1, b1, w2, b2):
    """One-time formatting of PyTorch-style (out, in) weights for the kernel."""
    w1_t = jnp.asarray(w1, jnp.bfloat16).T                    # (nz, 128)
    w2_t = jnp.asarray(w2, jnp.bfloat16).T                    # (128, 784)
    b1_r = jnp.asarray(b1, jnp.float32).reshape(1, HIDDEN)
    b2_r = jnp.asarray(b2, jnp.float32).reshape(1, OUT)
    return w1_t, b1_r, w2_t, b2_r


def generator_wasserstein_forward(x, params, out_dtype=jnp.float32):
    """x: (B, ..., nz-flattenable). params from prepare_params().
    Returns (B, 1, 28, 28) in out_dtype (default float32, matching the module)."""
    w1_t, b1_r, w2_t, b2_r = params
    B = x.shape[0]
    x2d = x.reshape(B, NZ).astype(jnp.bfloat16)

    # Batch tiling: sublane-multiple tiles, capped for VMEM; for B > 8 force at
    # least 2 grid steps so the "parallel" axis can split across v7x's 2 TCs.
    if B > 8:
        tb = min(_round_up(pl.cdiv(B, 2), 8), TB_MAX)
    else:
        tb = 8
    grid = pl.cdiv(B, tb)
    bp = grid * tb
    if bp != B:
        x2d = jnp.pad(x2d, ((0, bp - B), (0, 0)))

    out_bytes = jnp.dtype(out_dtype).itemsize
    cost = pl.CostEstimate(
        flops=2 * bp * (NZ * HIDDEN + HIDDEN * OUT),
        transcendentals=bp * OUT,
        bytes_accessed=(bp * (NZ * 2 + OUT * out_bytes)
                        + 2 * (NZ * HIDDEN + HIDDEN * OUT)   # bf16 weights
                        + 4 * (HIDDEN + OUT)),               # f32 biases
    )

    out2d = pl.pallas_call(
        _generator_kernel,
        out_shape=jax.ShapeDtypeStruct((bp, OUT), out_dtype),
        grid=(grid,),
        in_specs=[
            pl.BlockSpec((tb, NZ), lambda i: (i, 0)),          # x tile per step
            pl.BlockSpec((NZ, HIDDEN), lambda i: (0, 0)),      # weights/biases
            pl.BlockSpec((1, HIDDEN), lambda i: (0, 0)),       # stay resident
            pl.BlockSpec((HIDDEN, OUT), lambda i: (0, 0)),
            pl.BlockSpec((1, OUT), lambda i: (0, 0)),
        ],
        out_specs=pl.BlockSpec((tb, OUT), lambda i: (i, 0)),
        compiler_params=pltpu.CompilerParams(
            dimension_semantics=("parallel",),   # megacore-shardable batch axis
            vmem_limit_bytes=32 << 20,
        ),
        cost_estimate=cost,
    )(x2d, w1_t, b1_r, w2_t, b2_r)

    if bp != B:
        out2d = out2d[:B]
    return out2d.reshape(B, 1, 28, 28)


def init_params(key):
    """Deterministic parameter init matching nn.Linear shapes (out, in)."""
    k1, k2, k3, k4 = jax.random.split(key, 4)
    s1 = 1.0 / jnp.sqrt(NZ)
    s2 = 1.0 / jnp.sqrt(HIDDEN)
    w1 = jax.random.uniform(k1, (HIDDEN, NZ), jnp.float32, -s1, s1)
    b1 = jax.random.uniform(k2, (HIDDEN,), jnp.float32, -s1, s1)
    w2 = jax.random.uniform(k3, (OUT, HIDDEN), jnp.float32, -s2, s2)
    b2 = jax.random.uniform(k4, (OUT,), jnp.float32, -s2, s2)
    return w1, b1, w2, b2


if __name__ == "__main__":
    key = jax.random.PRNGKey(0)
    kx, kp = jax.random.split(key)

    batch = 4
    x = jax.random.normal(kx, (batch, NZ), jnp.float32)  # latent noise (B, nz)
    w1, b1, w2, b2 = init_params(kp)
    params = prepare_params(w1, b1, w2, b2)               # one-time weight prep

    out = generator_wasserstein_forward(x, params)
    out = jax.block_until_ready(out)

    # sanity: shape + sigmoid range + numerical check vs plain f32 JAX reference
    # (bf16 matmul operands / approx reciprocal -> loosened tolerance).
    ref = jax.nn.sigmoid(
        jnp.maximum(x @ w1.T + b1, 0.0) @ w2.T + b2
    ).reshape(batch, 1, 28, 28)
    assert out.shape == (batch, 1, 28, 28)
    assert jnp.all(out >= 0.0) and jnp.all(out <= 1.0)
    assert jnp.allclose(out, ref, atol=2e-2, rtol=2e-2)

    print("KERNEL_OK")
</pallas_src>

<mosaic_0001>
module attributes {stable_mosaic.version = 11 : i64} {
  func.func @_generator_kernel(%arg0: i32, %arg1: memref<8x10xbf16, #tpu.memory_space<vmem>>, %arg2: memref<10x128xbf16, #tpu.memory_space<vmem>>, %arg3: memref<1x128xf32, #tpu.memory_space<vmem>>, %arg4: memref<128x784xbf16, #tpu.memory_space<vmem>>, %arg5: memref<1x784xf32, #tpu.memory_space<vmem>>, %arg6: memref<8x784xf32, #tpu.memory_space<vmem>>) attributes {dimension_semantics = [#tpu.dimension_semantics<parallel>], iteration_bounds = array<i64: 1>, scalar_prefetch = 0 : i64, scratch_operands = 0 : i64, tpu.core_type = #tpu.core_type<tc>, window_params = [{transform_indices = @transform_0, window_bounds = array<i64: 8, 10>}, {pipeline_mode = #tpu.pipeline_mode<synchronous>, transform_indices = @transform_1, window_bounds = array<i64: 10, 128>}, {pipeline_mode = #tpu.pipeline_mode<synchronous>, transform_indices = @transform_2, window_bounds = array<i64: 1, 128>}, {pipeline_mode = #tpu.pipeline_mode<synchronous>, transform_indices = @transform_3, window_bounds = array<i64: 128, 784>}, {pipeline_mode = #tpu.pipeline_mode<synchronous>, transform_indices = @transform_4, window_bounds = array<i64: 1, 784>}, {transform_indices = @transform_5, window_bounds = array<i64: 8, 784>}]} {
    %c0 = arith.constant 0 : index
    %c0_0 = arith.constant 0 : index
    %0 = vector.load %arg1[%c0, %c0_0] : memref<8x10xbf16, #tpu.memory_space<vmem>>, vector<8x10xbf16>
    %c0_1 = arith.constant 0 : index
    %c0_2 = arith.constant 0 : index
    %1 = vector.load %arg2[%c0_1, %c0_2] : memref<10x128xbf16, #tpu.memory_space<vmem>>, vector<10x128xbf16>
    %cst = arith.constant dense<0.000000e+00> : vector<8x128xf32>
    %2 = tpu.matmul %0, %1, %cst {dimension_numbers = #tpu.dot_dimension_numbers<[1], [0], [0], [1], [0, 0, 1, 1], [], []>} : vector<8x10xbf16>, vector<10x128xbf16>, vector<8x128xf32> -> vector<8x128xf32>
    %c0_3 = arith.constant 0 : index
    %c0_4 = arith.constant 0 : index
    %3 = vector.load %arg3[%c0_3, %c0_4] : memref<1x128xf32, #tpu.memory_space<vmem>>, vector<1x128xf32>
    %4 = vector.broadcast %3 : vector<1x128xf32> to vector<8x128xf32>
    %5 = arith.addf %2, %4 : vector<8x128xf32>
    %cst_5 = arith.constant 0.000000e+00 : f32
    %6 = vector.broadcast %cst_5 : f32 to vector<8x128xf32>
    %7 = arith.maximumf %5, %6 : vector<8x128xf32>
    %8 = arith.truncf %7 : vector<8x128xf32> to vector<8x128xbf16>
    %c0_6 = arith.constant 0 : index
    %c0_7 = arith.constant 0 : index
    %9 = vector.load %arg4[%c0_6, %c0_7] : memref<128x784xbf16, #tpu.memory_space<vmem>>, vector<128x784xbf16>
    %cst_8 = arith.constant dense<0.000000e+00> : vector<8x784xf32>
    %10 = tpu.matmul %8, %9, %cst_8 {dimension_numbers = #tpu.dot_dimension_numbers<[1], [0], [0], [1], [0, 0, 1, 1], [], []>} : vector<8x128xbf16>, vector<128x784xbf16>, vector<8x784xf32> -> vector<8x784xf32>
    %c0_9 = arith.constant 0 : index
    %c0_10 = arith.constant 0 : index
    %11 = vector.load %arg5[%c0_9, %c0_10] : memref<1x784xf32, #tpu.memory_space<vmem>>, vector<1x784xf32>
    %12 = vector.broadcast %11 : vector<1x784xf32> to vector<8x784xf32>
    %13 = arith.addf %10, %12 : vector<8x784xf32>
    %cst_11 = arith.constant 0.000000e+00 : f32
    %14 = vector.broadcast %cst_11 : f32 to vector<8x784xf32>
    %15 = arith.subf %14, %13 : vector<8x784xf32>
    %16 = math.exp %15 : vector<8x784xf32>
    %cst_12 = arith.constant 1.000000e+00 : f32
    %17 = vector.broadcast %cst_12 : f32 to vector<8x784xf32>
    %18 = arith.addf %17, %16 : vector<8x784xf32>
    %19 = tpu.reciprocal %18 {approx = true} : vector<8x784xf32> -> vector<8x784xf32>
    %c0_13 = arith.constant 0 : index
    %c0_14 = arith.constant 0 : index
    %20 = vector.load %arg6[%c0_13, %c0_14] : memref<8x784xf32, #tpu.memory_space<vmem>>, vector<8x784xf32>
    tpu.vector_store %arg6[%c0_13, %c0_14], %19 {strides = array<i32>} : memref<8x784xf32, #tpu.memory_space<vmem>>, vector<8x784xf32>,
    return
  }
  func.func @transform_0(%arg0: i32) -> (i32, i32) {
    %c0_i32 = arith.constant 0 : i32
    %c0_i32_0 = arith.constant 0 : i32
    return %arg0, %c0_i32 : i32, i32
  }
  func.func @transform_1(%arg0: i32) -> (i32, i32) {
    %c0_i32 = arith.constant 0 : i32
    %c0_i32_0 = arith.constant 0 : i32
    %c0_i32_1 = arith.constant 0 : i32
    return %c0_i32, %c0_i32_0 : i32, i32
  }
  func.func @transform_2(%arg0: i32) -> (i32, i32) {
    %c0_i32 = arith.constant 0 : i32
    %c0_i32_0 = arith.constant 0 : i32
    %c0_i32_1 = arith.constant 0 : i32
    return %c0_i32, %c0_i32_0 : i32, i32
  }
  func.func @transform_3(%arg0: i32) -> (i32, i32) {
    %c0_i32 = arith.constant 0 : i32
    %c0_i32_0 = arith.constant 0 : i32
    %c0_i32_1 = arith.constant 0 : i32
    return %c0_i32, %c0_i32_0 : i32, i32
  }
  func.func @transform_4(%arg0: i32) -> (i32, i32) {
    %c0_i32 = arith.constant 0 : i32
    %c0_i32_0 = arith.constant 0 : i32
    %c0_i32_1 = arith.constant 0 : i32
    return %c0_i32, %c0_i32_0 : i32, i32
  }
  func.func @transform_5(%arg0: i32) -> (i32, i32) {
    %c0_i32 = arith.constant 0 : i32
    %c0_i32_0 = arith.constant 0 : i32
    return %arg0, %c0_i32 : i32, i32
  }
}

</mosaic_0001>

<bundles_post_ra>
// kernel: tpu_custom_call.1
= control target key start
LH: loop header
LB: loop body
LE: loop exit
PB: predicated region body
PF: predicated region fallthrough
CT: control target
= control target key end

     0   :  { %vm41_vm0 = vcmask 1044480   ;;  %v929_v0 = vmov 0.0   ;;  %vm930_vm1 = vmmov 0   ;;  %vm37_vm2 = vcmask 80896   ;;  %s1168_s0 = inlined_call_operand.vmem [shape: bf16[8,10], index: 0, kind: input, shape index: {}]   ;;  %s1169_s1 = inlined_call_operand.vmem [shape: bf16[10,128], index: 1, kind: input, shape index: {}]   ;;  %s1170_s2 = inlined_call_operand.vmem [shape: f32[1,128], index: 2, kind: input, shape index: {}]   ;;  %s1171_s3 = inlined_call_operand.vmem [shape: bf16[128,784], index: 3, kind: input, shape index: {}]   ;;  %s1172_s4 = inlined_call_operand.vmem [shape: f32[1,784], index: 4, kind: input, shape index: {}]   ;;  %s1173_s5 = inlined_call_operand.hbm [shape: f32[8,784], index: 5, kind: output, shape index: {}]  }
   0x1   :  { %766 = vmatprep.subr.bf16.mxu0 %v929_v0  ;;  %v796_v1 = vld [vmem:[%s1169_s1] sm:$0x1f]   ;;  %768 = vmatprep.mubr.msk.bf16.mxu0 %vm930_vm1, %v929_v0  ;;  %v801_v6 = vld [vmem:[%s1171_s3 + $0xc] ss:$28 sps:$4 sm:$0xff]   ;;  %v803_v8 = vld [vmem:[%s1171_s3 + $0x3c] ss:$28 sps:$4 sm:$0xff]  }
   0x2   :  { %v22_v2 = vld [vmem:[%s1168_s0] sm:$0xf]  ;;  %v43_v4 = vsel %vm41_vm0, %v796_v1, 0  ;;  %v799_v5 = vld [vmem:[%s1171_s3 + $0x8] ss:$28 sps:$4 sm:$0xff]  }
   0x3   :  { %v797_v3 = vld [vmem:[%s1171_s3 + $0x4] ss:$28 sps:$4 sm:$0xff]   ;;  %767 = vmatpush3.bf16.msra.mxu0 %v43_v4  ;;  %v808_v11 = vld [vmem:[%s1171_s3 + $0x38] ss:$28 sps:$4 sm:$0xff]   ;;  %v814_v14 = vld [vmem:[%s1171_s3 + $0x70] ss:$28 sps:$4 sm:$0xff]  }
   0x4   :  { %476 = vmatprep.subr.bf16.mxu1 %v797_v3  ;;  %v802_v7 = vld [vmem:[%s1171_s3] ss:$28 sps:$4 sm:$0xff]   ;;  %517 = vmatprep.subr.bf16.mxu0 %v801_v6  ;;  %v809_v12 = vld [vmem:[%s1171_s3 + $0x74] ss:$28 sps:$4 sm:$0xff]   ;;  %v815_v15 = vld [vmem:[%s1171_s3 + $0xac] ss:$28 sps:$4 sm:$0xff]  }
   0x5   :  { %477 = vmatpush1.bf16.msra.mxu1 %v802_v7  ;;  %v805_v9 = vld [vmem:[%s1171_s3 + $0x40] ss:$28 sps:$4 sm:$0xff]   ;;  %v811_v16 = vld [vmem:[%s1171_s3 + $0x78] ss:$28 sps:$4 sm:$0xff]   ;;  %v820_v18 = vld [vmem:[%s1171_s3 + $0xa8] ss:$28 sps:$4 sm:$0xff]  }
   0x6   :  { %v807_v10 = vld [vmem:[%s1171_s3 + $0x44] ss:$28 sps:$4 sm:$0xff]   ;;  %769 = vmatmul.mubr.msk.bf16.vlgmr.msra.gmra.mrb[0].mxu0 %vm37_vm2, %v22_v2  ;;  %478 = vmatprep.subr.bf16.mxu1 %v803_v8  ;;  %v813_v13 = vld [vmem:[%s1171_s3 + $0x7c] ss:$28 sps:$4 sm:$0xff]   ;;  %v819_v17 = vld [vmem:[%s1171_s3 + $0xb4] ss:$28 sps:$4 sm:$0xff]  }
   0x7   :  { %518 = vmatpush1.bf16.msra.mxu0 %v799_v5  ;;  %v821_v19 = vld [vmem:[%s1171_s3 + $0xe4] ss:$28 sps:$4 sm:$0xff]   ;;  %v817_v20 = vld [vmem:[%s1171_s3 + $0xb0] ss:$28 sps:$4 sm:$0xff]   ;;  %v827_v23 = vld [vmem:[%s1171_s3 + $0x11c] ss:$28 sps:$4 sm:$0xff]  }
   0x8   :  { %519 = vmatprep.subr.bf16.mxu0 %v807_v10  ;;  %v825_v21 = vld [vmem:[%s1171_s3 + $0xec] ss:$28 sps:$4 sm:$0xff]   ;;  %v826_v22 = vld [vmem:[%s1171_s3 + $0xe0] ss:$28 sps:$4 sm:$0xff]   ;;  %v832_v26 = vld [vmem:[%s1171_s3 + $0x118] ss:$28 sps:$4 sm:$0xff]  }
   0x9   :  { %479 = vmatpush1.bf16.msra.mxu1 %v808_v11  ;;  %v823_v24 = vld [vmem:[%s1171_s3 + $0xe8] ss:$28 sps:$4 sm:$0xff]   ;;  %v833_v27 = vld [vmem:[%s1171_s3 + $0x154] ss:$28 sps:$4 sm:$0xff]   ;;  %v829_v28 = vld [vmem:[%s1171_s3 + $0x120] ss:$28 sps:$4 sm:$0xff]  }
   0xa   :  { %480 = vmatprep.subr.bf16.mxu1 %v809_v12  ;;  %v831_v25 = vld [vmem:[%s1171_s3 + $0x124] ss:$28 sps:$4 sm:$0xff]   ;;  %v837_v29 = vld [vmem:[%s1171_s3 + $0x15c] ss:$28 sps:$4 sm:$0xff]   ;;  %v838_v30 = vld [vmem:[%s1171_s3 + $0x150] ss:$28 sps:$4 sm:$0xff]  }
   0xb   :  { %520 = vmatpush1.bf16.msra.mxu0 %v805_v9  ;;  %v835_v31 = vld [vmem:[%s1171_s3 + $0x158] ss:$28 sps:$4 sm:$0xff]  }
   0xc   :  { %521 = vmatprep.subr.bf16.mxu0 %v813_v13 }
   0xd   :  { %481 = vmatpush1.bf16.msra.mxu1 %v814_v14 }
   0xe   :  { %482 = vmatprep.subr.bf16.mxu1 %v815_v15 }
   0xf   :  { %522 = vmatpush1.bf16.msra.mxu0 %v811_v16 }
  0x10   :  { %523 = vmatprep.subr.bf16.mxu0 %v819_v17 }
  0x11   :  { %483 = vmatpush1.bf16.msra.mxu1 %v820_v18 }
  0x12   :  { %484 = vmatprep.subr.bf16.mxu1 %v821_v19 }
  0x13   :  { %524 = vmatpush1.bf16.msra.mxu0 %v817_v20 }
  0x14   :  { %525 = vmatprep.subr.bf16.mxu0 %v825_v21 }
  0x15   :  { %485 = vmatpush1.bf16.msra.mxu1 %v826_v22 }
  0x16   :  { %486 = vmatprep.subr.bf16.mxu1 %v827_v23 }
  0x17   :  { %526 = vmatpush1.bf16.msra.mxu0 %v823_v24 }
  0x18   :  { %527 = vmatprep.subr.bf16.mxu0 %v831_v25 }
  0x19   :  { %487 = vmatpush1.bf16.msra.mxu1 %v832_v26 }
  0x1a   :  { %488 = vmatprep.subr.bf16.mxu1 %v833_v27 }
  0x1b   :  { %528 = vmatpush1.bf16.msra.mxu0 %v829_v28 }
  0x1c   :  { %529 = vmatprep.subr.bf16.mxu0 %v837_v29 }
  0x1d   :  { %489 = vmatpush1.bf16.msra.mxu1 %v838_v30 }
  0x1f   :  { %530 = vmatpush1.bf16.msra.mxu0 %v835_v31 }
  0x20   :  { %10 = vsyncpa [#allocation3], 0  ;;  %v839_v32 = vld [vmem:[%s1171_s3 + $0x18c] ss:$28 sps:$4 sm:$0xff]   ;;  %v843_v33 = vld [vmem:[%s1171_s3 + $0x194] ss:$28 sps:$4 sm:$0xff]   ;;  %v153_v6 = vlaneseq }
  0x21   :  { %v841_v34 = vld [vmem:[%s1171_s3 + $0x190] ss:$28 sps:$4 sm:$0xff]   ;;  %v844_v35 = vld [vmem:[%s1171_s3 + $0x188] ss:$28 sps:$4 sm:$0xff]   ;;  %490 = vmatprep.subr.bf16.mxu1 %v839_v32  ;;  %531 = vmatprep.subr.bf16.mxu0 %v843_v33  ;;  %v931_v37 = vmov 0   ;;  %vm680_vm3 = vcmask 130048  }
  0x22   :  { %491 = vmatpush1.bf16.msra.mxu1 %v844_v35  ;;  %v847_v36 = vld [vmem:[%s1171_s3 + $0x14] ss:$28 sps:$4 sm:$0xff]   ;;  %508 = vmatprep.mubr.bf16.mxu1 %v931_v37  ;;  %v696_v38 = vld [vmem:[%s1170_s2] ss:$0 sm:$0xff]  ;;  %v851_v48 = vld [vmem:[%s1171_s3 + $0x4c] ss:$28 sps:$4 sm:$0xff]  }
  0x23   :  { %532 = vmatpush1.bf16.msra.mxu0 %v841_v34  ;;  %549 = vmatprep.mubr.bf16.mxu0 %v931_v37  ;;  %v845_v45 = vld [vmem:[%s1171_s3 + $0x10] ss:$28 sps:$4 sm:$0xff]   ;;  %v848_v46 = vld [vmem:[%s1171_s3 + $0x18] ss:$28 sps:$4 sm:$0xff]   ;;  %v849_v49 = vld [vmem:[%s1171_s3 + $0x48] ss:$28 sps:$4 sm:$0xff]  }
  0x24   :  { %772 = vmatprep.subr.bf16.mxu0 %v929_v0  ;;  %558 = vmatprep.subr.bf16.mxu1 %v847_v36  ;;  %v852_v50 = vld [vmem:[%s1171_s3 + $0x50] ss:$28 sps:$4 sm:$0xff]   ;;  %v855_v51 = vld [vmem:[%s1171_s3 + $0x84] ss:$28 sps:$4 sm:$0xff]   ;;  %v859_v54 = vld [vmem:[%s1171_s3 + $0xbc] ss:$28 sps:$4 sm:$0xff]  }
  0x25   :  { %v853_v52 = vld [vmem:[%s1171_s3 + $0x80] ss:$28 sps:$4 sm:$0xff]   ;;  %v856_v53 = vld [vmem:[%s1171_s3 + $0x88] ss:$28 sps:$4 sm:$0xff]   ;;  %v857_v55 = vld [vmem:[%s1171_s3 + $0xb8] ss:$28 sps:$4 sm:$0xff]  }
  0x26   :  { %v860_v56 = vld [vmem:[%s1171_s3 + $0xc0] ss:$28 sps:$4 sm:$0xff]   ;;  %v863_v57 = vld [vmem:[%s1171_s3 + $0xf4] ss:$28 sps:$4 sm:$0xff]   ;;  %v867_v60 = vld [vmem:[%s1171_s3 + $0x12c] ss:$28 sps:$4 sm:$0xff]  }
  0x27   :  { %v861_v58 = vld [vmem:[%s1171_s3 + $0xf0] ss:$28 sps:$4 sm:$0xff]   ;;  %v864_v59 = vld [vmem:[%s1171_s3 + $0xf8] ss:$28 sps:$4 sm:$0xff]   ;;  %v865_v61 = vld [vmem:[%s1171_s3 + $0x128] ss:$28 sps:$4 sm:$0xff]  }
  0x28   :  { %v868_v62 = vld [vmem:[%s1171_s3 + $0x130] ss:$28 sps:$4 sm:$0xff]   ;;  %v871_v63 = vld [vmem:[%s1171_s3 + $0x164] ss:$28 sps:$4 sm:$0xff]   ;;  %v875_v3 = vld [vmem:[%s1171_s3 + $0x19c] ss:$28 sps:$4 sm:$0xff]  }
  0x29   :  { %v869_v1 = vld [vmem:[%s1171_s3 + $0x160] ss:$28 sps:$4 sm:$0xff]   ;;  %v872_v2 = vld [vmem:[%s1171_s3 + $0x168] ss:$28 sps:$4 sm:$0xff]   ;;  %v873_v4 = vld [vmem:[%s1171_s3 + $0x198] ss:$28 sps:$4 sm:$0xff]  }
  0x2a   :  { %v876_v5 = vld [vmem:[%s1171_s3 + $0x1a0] ss:$28 sps:$4 sm:$0xff]   ;;  %v154_v7 = vshrl.u32 %v153_v6, 7  ;;  %s932_s3 = smov [#allocation2]  }
  0x2b   :  { %v151_v10 = vld [vmem:[%s1172_s4] sm:$0x7f]  ;;  %s688_s4 = sshll.u32 %s932_s3, 4  ;;  %s689_s4 = int_to_ptr.vmem [resolvable:$true] %s688_s4 }
  0x2c   :  { %v155_v8 = vsub.s32 0, %v154_v7  ;;  %v163_v9 = vsub.s32 2, %v154_v7  ;;  %v159_v11 = vsub.s32 1, %v154_v7  ;;  %v167_v12 = vsub.s32 3, %v154_v7  ;;  %s905_s27 = scalar_lea.vmem %s689_s4, 896  ;;  %p910_p1 = scmp.lt.s32.totalorder %s689_s4, %s689_s4 }
  0x2d   :  { %p906_p0 = scmp.ne.s32.totalorder %s689_s4, %s905_s27  ;;  %p911_p2 = scmp.lt.s32.totalorder %s905_s27, %s905_s27 }
  0x2e   :  { %v156_v13 = vrot.slane %v151_v10, %v155_v8  ;;  %v164_v14 = vrot.slane %v151_v10, %v163_v9  ;;  %v160_v15 = vrot.slane %v151_v10, %v159_v11  ;;  %v168_v16 = vrot.slane %v151_v10, %v167_v12 }
  0x2f   :  { %p912_p3 = por %p911_p2, %p910_p1 }
  0x31   :  { %p913_p4 = pnand %p912_p3, %p906_p0 }
  0xd9   :  { %v79_v39 = vpop.f32.mrb[0].mxu0 }
  0xda   :  { %v80_v40 = vadd.f32 %v696_v38, %v79_v39  ;;  %v770_v41 = vpop.f32.mrb[1].mxu0 }
  0xdb   :  { %v82_v42 = vpop.f32.mrb[2].mxu0 }
  0xdc   :  { %v85_v43 = vmax.f32 %v80_v40, 0.0  ;;  %v771_v44 = vpop.f32.mrb[3].mxu0 }
  0xdd   :  { %v171_v44 = vsub.s32 4, %v154_v7 }
  0xde   :  { %v86_v47 = vpack.c.bf16 %v85_v43, %v85_v43 }
  0xe0   :  { %509 = vmatmul.mubr.bf16.vlgmr.msra.gmra.mrb[0].mxu1 %v86_v47  ;;  %550 = vmatmul.mubr.bf16.vlgmr.msra.gmra.mrb[4].mxu0 %v86_v47 }
  0xe1   :  { %559 = vmatpush1.bf16.msra.mxu1 %v845_v45  ;;  %773 = vmatpush3.bf16.msra.mxu0 %v848_v46  ;;  %v179_v45 = vsub.s32 6, %v154_v7  ;;  %v175_v46 = vsub.s32 5, %v154_v7 }
  0xe2   :  { %560 = vmatprep.subr.bf16.mxu1 %v851_v48  ;;  %774 = vmatprep.subr.bf16.mxu0 %v929_v0 }
  0xe3   :  { %590 = vmatprep.mubr.bf16.mxu1 %v931_v37  ;;  %788 = vmatprep.mubr.msk.bf16.mxu0 %vm930_vm1, %v929_v0  ;;  %v180_v48 = vrot.slane %v151_v10, %v179_v45 }
  0xe5   :  { %561 = vmatpush1.bf16.msra.mxu1 %v849_v49  ;;  %775 = vmatpush3.bf16.msra.mxu0 %v852_v50  ;;  %v176_v50 = vrot.slane %v151_v10, %v175_v46 }
  0xe6   :  { %562 = vmatprep.subr.bf16.mxu1 %v855_v51  ;;  %776 = vmatprep.subr.bf16.mxu0 %v929_v0 }
  0xe9   :  { %563 = vmatpush1.bf16.msra.mxu1 %v853_v52  ;;  %777 = vmatpush3.bf16.msra.mxu0 %v856_v53 }
  0xea   :  { %564 = vmatprep.subr.bf16.mxu1 %v859_v54  ;;  %778 = vmatprep.subr.bf16.mxu0 %v929_v0 }
  0xed   :  { %565 = vmatpush1.bf16.msra.mxu1 %v857_v55  ;;  %779 = vmatpush3.bf16.msra.mxu0 %v860_v56 }
  0xee   :  { %566 = vmatprep.subr.bf16.mxu1 %v863_v57  ;;  %780 = vmatprep.subr.bf16.mxu0 %v929_v0 }
  0xf1   :  { %567 = vmatpush1.bf16.msra.mxu1 %v861_v58  ;;  %781 = vmatpush3.bf16.msra.mxu0 %v864_v59 }
  0xf2   :  { %568 = vmatprep.subr.bf16.mxu1 %v867_v60  ;;  %782 = vmatprep.subr.bf16.mxu0 %v929_v0 }
  0xf5   :  { %569 = vmatpush1.bf16.msra.mxu1 %v865_v61  ;;  %783 = vmatpush3.bf16.msra.mxu0 %v868_v62 }
  0xf6   :  { %570 = vmatprep.subr.bf16.mxu1 %v871_v63  ;;  %784 = vmatprep.subr.bf16.mxu0 %v929_v0 }
  0xf9   :  { %571 = vmatpush1.bf16.msra.mxu1 %v869_v1  ;;  %785 = vmatpush3.bf16.msra.mxu0 %v872_v2 }
  0xfa   :  { %572 = vmatprep.subr.bf16.mxu1 %v875_v3  ;;  %786 = vmatprep.subr.bf16.mxu0 %v929_v0 }
  0xfd   :  { %573 = vmatpush1.bf16.msra.mxu1 %v873_v4  ;;  %787 = vmatpush3.bf16.msra.mxu0 %v876_v5 }
 0x100   :  { %591 = vmatmul.mubr.bf16.vlgmr.msra.gmra.mrb[4].mxu1 %v86_v47  ;;  %789 = vmatmul.mubr.bf16.vlgmr.msra.gmra.mrb[8].mxu0 %v86_v47  ;;  %v172_v47 = vrot.slane %v151_v10, %v171_v44 }
 0x1b3   :  { %v510_v17 = vpop.f32.mrb[0].mxu1  ;;  %v551_v0 = vpop.f32.mrb[4].mxu0 }
 0x1b4   :  { %v511_v18 = vadd.f32 %v510_v17, %v156_v13  ;;  %v552_v19 = vadd.f32 %v551_v0, %v164_v14  ;;  %v512_v20 = vpop.f32.mrb[1].mxu1  ;;  %v553_v21 = vpop.f32.mrb[5].mxu0 }
 0x1b5   :  { %v513_v22 = vadd.f32 %v512_v20, %v160_v15  ;;  %v554_v23 = vadd.f32 %v553_v21, %v168_v16  ;;  %v514_v24 = vpop.f32.mrb[2].mxu1  ;;  %v555_v25 = vpop.f32.mrb[6].mxu0 }
 0x1b6   :  { %v639_v26 = vsub.f32 0.0, %v511_v18  ;;  %v641_v27 = vsub.f32 0.0, %v552_v19  ;;  %v515_v28 = vpop.f32.mrb[3].mxu1  ;;  %v556_v29 = vpop.f32.mrb[7].mxu0 }
 0x1b7   :  { %v640_v30 = vsub.f32 0.0, %v513_v22  ;;  %v642_v31 = vsub.f32 0.0, %v554_v23 }
 0x1b8   :  { %v646_v32 = vmul.f32 1.442695, %v639_v26  ;;  %v650_v33 = vmul.f32 1.442695, %v641_v27 }
 0x1b9   :  { %v648_v34 = vmul.f32 1.442695, %v640_v30  ;;  %v652_v35 = vmul.f32 1.442695, %v642_v31 }
 0x1ba   :  { %877 = vpow2.f32 %v646_v32 }
 0x1bb   :  { %879 = vpow2.f32 %v650_v33 }
 0x1bc   :  { %881 = vpow2.f32 %v648_v34 }
 0x1bd   :  { %883 = vpow2.f32 %v652_v35 }
 0x1c4   :  { %v878_v36 = vpop.eup %877 }
 0x1c5   :  { %v880_v37 = vpop.eup %879  ;;  %v660_v38 = vadd.f32 1.0, %v878_v36 }
 0x1c6   :  { %v882_v39 = vpop.eup %881  ;;  %v662_v40 = vadd.f32 1.0, %v880_v37 }
 0x1c7   :  { %v884_v41 = vpop.eup %883  ;;  %885 = vrcp.f32 %v660_v38  ;;  %v661_v42 = vadd.f32 1.0, %v882_v39 }
 0x1c8   :  { %887 = vrcp.f32 %v662_v40  ;;  %v663_v43 = vadd.f32 1.0, %v884_v41 }
 0x1c9   :  { %889 = vrcp.f32 %v661_v42 }
 0x1ca   :  { %891 = vrcp.f32 %v663_v43 }
 0x1d1   :  { %v886_v49 = vpop.eup %885 }
 0x1d2   :  { %v888_v51 = vpop.eup %887  ;;  %674 = vst [vmem:[#allocation2] sm:$0xff] %v886_v49 }
 0x1d3   :  { %v890_v52 = vpop.eup %889  ;;  %676 = vst [vmem:[#allocation2 + $0x10] sm:$0xff] %v888_v51  ;;  %v592_v53 = vpop.f32.mrb[4].mxu1 }
 0x1d4   :  { %v633_v54 = vpop.f32.mrb[8].mxu0  ;;  %v892_v55 = vpop.eup %891  ;;  %675 = vst [vmem:[#allocation2 + $0x8] sm:$0xff] %v890_v52  ;;  %v593_v56 = vadd.f32 %v592_v53, %v172_v47 }
 0x1d5   :  { %v634_v57 = vadd.f32 %v633_v54, %v180_v48  ;;  %v594_v58 = vpop.f32.mrb[5].mxu1  ;;  %v790_v59 = vpop.f32.mrb[9].mxu0  ;;  %677 = vst [vmem:[#allocation2 + $0x18] sm:$0xff] %v892_v55 }
 0x1d6   :  { %v595_v60 = vadd.f32 %v594_v58, %v176_v50  ;;  %v596_v61 = vpop.f32.mrb[6].mxu1  ;;  %v636_v62 = vpop.f32.mrb[10].mxu0  ;;  %v643_v63 = vsub.f32 0.0, %v593_v56 }
 0x1d7   :  { %v645_v1 = vsub.f32 0.0, %v634_v57  ;;  %v597_v2 = vpop.f32.mrb[7].mxu1  ;;  %v791_v3 = vpop.f32.mrb[11].mxu0 }
 0x1d8   :  { %v644_v4 = vsub.f32 0.0, %v595_v60  ;;  %v654_v5 = vmul.f32 1.442695, %v643_v63 }
 0x1d9   :  { %v658_v6 = vmul.f32 1.442695, %v645_v1 }
 0x1da   :  { %v656_v7 = vmul.f32 1.442695, %v644_v4  ;;  %893 = vpow2.f32 %v654_v5 }
 0x1db   :  { %895 = vpow2.f32 %v658_v6 }
 0x1dc   :  { %897 = vpow2.f32 %v656_v7 }
 0x1e4   :  { %v894_v8 = vpop.eup %893 }
 0x1e5   :  { %v896_v9 = vpop.eup %895  ;;  %v664_v10 = vadd.f32 1.0, %v894_v8 }
 0x1e6   :  { %v898_v11 = vpop.eup %897  ;;  %v666_v12 = vadd.f32 1.0, %v896_v9 }
 0x1e7   :  { %899 = vrcp.f32 %v664_v10  ;;  %v665_v13 = vadd.f32 1.0, %v898_v11 }
 0x1e8   :  { %901 = vrcp.f32 %v666_v12 }
 0x1e9   :  { %903 = vrcp.f32 %v665_v13 }
 0x1f1   :  { %v900_v14 = vpop.eup %899 }
 0x1f2   :  { %v902_v15 = vpop.eup %901  ;;  %678 = vst [vmem:[#allocation2 + $0x20] sm:$0xff] %v900_v14 }
 0x1f3   :  { %v904_v16 = vpop.eup %903  ;;  %681 = vst.msk [vmem:[#allocation2 + $0x30] sm:$0xff] %vm680_vm3, %v902_v15 }
 0x1f4   :  { %679 = vst [vmem:[#allocation2 + $0x28] sm:$0xff] %v904_v16 }
 0x1f5   :  { %916 = shalt.err (!%p913_p4)
}
 0x1f6   :  { %s917_s29 = scalar_lea.hbm %s1173_s5, 896 }
 0x1f7   :  { %p918_p5 = scmp.ne.s32.totalorder %s1173_s5, %s917_s29  ;;  %p921_p6 = scmp.lt.u32.totalorder %s917_s29, %s1173_s5 }
 0x1f9   :  { %p923_p7 = pnand %p921_p6, %p918_p5 }
 0x1fb   :  { %926 = shalt.err (!%p923_p7)
}
 0x1fc   :  { %691 = dma.vmem_to_hbm [thread:$0]  %s689_s4, 896, %s1173_s5, [#allocation3]  }
 0x1fd   :  { %927 = dma.done.wait [#allocation3], 896  }
 0x1fe   :  { %928 = vsyncadd [#allocation3], 4294966400 }
 0x1ff   :  { %695 = vsyncpa [#allocation3], 1 }

</bundles_post_ra>
